<compile_context>
chip_gen: v6e
topology: v6e:2x2x1
jax: 0.10.0
libtpu: 0.0.40
codegen_flags: <defaults>
</compile_context>

<pallas_src>
import jax
import jax.numpy as jnp
from jax.experimental import pallas as pl
from jax.experimental.pallas import tpu as pltpu

_LANE = 128                     # vreg lane width
_MAX_COLS = 1024                # lane-dense column target
_TARGET_BLOCK_BYTES = 4 << 20   # ~4 MiB per input block
_VMEM_LIMIT_BYTES = 48 << 20    # explicit scoped-VMEM cap (safe on v5e/v6e/v7x)


def _round_up(a, b):
    return (a + b - 1) // b * b


def _scaler_kernel(scale_ref, x_ref, o_ref):
    # scale_ref: (1,) f32 in SMEM holding 1/rate (single scalar load per step).
    inv_rate = scale_ref[0]
    # Multiply in f32 and cast back (matches x / rate to ~1 ulp for bf16/f16).
    o_ref[...] = (x_ref[...].astype(jnp.float32) * inv_rate).astype(o_ref.dtype)


def scaler_forward(x, rate, training=True):
    """Pallas equivalent of Scaler.forward.

    Args:
      x: input array of any shape (e.g. NCHW (B, C, H, W)).
      rate: scalar divisor used in training mode (python number or 0-d array).
      training: mirrors nn.Module.training.
    """
    if not training:
        # Eval mode is a pure identity in the reference module.
        return x

    x = jnp.asarray(x)
    if not jnp.issubdtype(x.dtype, jnp.floating):
        # torch true-division promotes integer inputs to floating point.
        x = x.astype(jnp.float32)

    # Runtime scalar (f32) -> no recompilation for different rates.
    inv_rate = (jnp.float32(1.0) / jnp.asarray(rate, dtype=jnp.float32)).reshape(1)

    orig_shape = x.shape
    n = x.size

    if n == 0 or n % _LANE != 0:
        # Ragged element counts would need a full pad pass + output slice pass
        # (2 extra HBM sweeps on a bandwidth-bound op); a fused XLA multiply is
        # strictly cheaper here, so use it instead of the Pallas slab.
        return (x.astype(jnp.float32) * inv_rate[0]).astype(x.dtype)

    # ---- Lane-dense 2D slab: (rows, cols), cols % 128 == 0, no padding ----
    cols = _LANE
    while cols * 2 <= _MAX_COLS and n % (cols * 2) == 0:
        cols *= 2
    rows = n // cols
    x2d = x.reshape(rows, cols)

    itemsize = jnp.dtype(x.dtype).itemsize
    sublane = max(8, 32 // itemsize)  # 8 for f32, 16 for bf16/f16, 32 for 1-byte

    # Size blocks by VMEM bytes (amortizes ~0.35us/step pipeline overhead).
    block_rows = max(
        sublane,
        (_TARGET_BLOCK_BYTES // (cols * itemsize)) // sublane * sublane,
    )
    if rows <= block_rows:
        if rows > sublane:
            # Keep >= 2 grid steps so both TensorCores get work on v7x.
            block_rows = _round_up(pl.cdiv(rows, 2), sublane)
        else:
            block_rows = rows  # full-dim block (always a legal block shape)

    grid = (pl.cdiv(rows, block_rows),)  # ragged last block handled by Pallas

    out2d = pl.pallas_call(
        _scaler_kernel,
        out_shape=jax.ShapeDtypeStruct((rows, cols), x.dtype),
        grid_spec=pltpu.PrefetchScalarGridSpec(
            num_scalar_prefetch=0,
            grid=grid,
            in_specs=[
                # 1/rate lives in SMEM; read once per grid step.
                pl.BlockSpec(memory_space=pltpu.MemorySpace.SMEM),
                # Large, lane-dense tiles of the flattened activation.
                pl.BlockSpec((block_rows, cols), lambda i: (i, 0)),
            ],
            out_specs=pl.BlockSpec((block_rows, cols), lambda i: (i, 0)),
        ),
        compiler_params=pltpu.CompilerParams(
            # Elementwise-independent axis: shard across TCs on v7x megacore.
            dimension_semantics=("parallel",),
            vmem_limit_bytes=_VMEM_LIMIT_BYTES,
        ),
        # NOTE: if the caller no longer needs `x` after this call,
        # input_output_aliases={1: 0} would let the output reuse the input
        # HBM buffer (halves peak footprint; traffic unchanged).
    )(inv_rate, x2d)

    return out2d.reshape(orig_shape)


if __name__ == "__main__":
    key = jax.random.PRNGKey(0)
    B, C, H, W = 2, 4, 16, 16
    x = jax.random.normal(key, (B, C, H, W), dtype=jnp.float32)
    rate = 0.5  # e.g. a dropout-style keep rate

    # Training path (scaling inside the Pallas kernel).
    y_train = jax.block_until_ready(scaler_forward(x, rate, training=True))
    # Eval path (identity).
    y_eval = jax.block_until_ready(scaler_forward(x, rate, training=False))

    assert y_train.shape == x.shape and y_train.dtype == x.dtype
    assert jnp.allclose(y_train, x / rate, atol=1e-6), "training path mismatch"
    assert jnp.array_equal(y_eval, x), "eval path mismatch"

    # Larger input exercising the multi-block grid (>= 2 steps).
    xb = jax.random.normal(jax.random.PRNGKey(1), (8, 16, 32, 32), dtype=jnp.float32)
    yb = jax.block_until_ready(scaler_forward(xb, 0.8, training=True))
    assert jnp.allclose(yb, xb / 0.8, atol=1e-5, rtol=1e-5), "multi-block mismatch"

    # bf16 input (dtype-aware sublane handling, f32 math inside the kernel).
    xh = jax.random.normal(jax.random.PRNGKey(2), (4, 8, 16, 16), dtype=jnp.bfloat16)
    yh = jax.block_until_ready(scaler_forward(xh, 0.25, training=True))
    assert yh.dtype == jnp.bfloat16
    assert jnp.allclose(
        yh.astype(jnp.float32), xh.astype(jnp.float32) / 0.25, atol=1e-2, rtol=1e-2
    ), "bf16 path mismatch"

    # Ragged size (n % 128 != 0) -> fused XLA fallback path.
    xr = jax.random.normal(jax.random.PRNGKey(3), (3, 5, 7), dtype=jnp.float32)
    yr = jax.block_until_ready(scaler_forward(xr, 0.25, training=True))
    assert jnp.allclose(yr, xr / 0.25, atol=1e-6), "ragged fallback mismatch"

    print("KERNEL_OK")
</pallas_src>

<mosaic_0001>
module attributes {stable_mosaic.version = 11 : i64} {
  func.func @_scaler_kernel(%arg0: i32, %arg1: memref<1xf32, #tpu.memory_space<smem>>, %arg2: memref<2x1024xf32, #tpu.memory_space<vmem>>, %arg3: memref<2x1024xf32, #tpu.memory_space<vmem>>) attributes {dimension_semantics = [#tpu.dimension_semantics<parallel>], iteration_bounds = array<i64: 1>, scalar_prefetch = 0 : i64, scratch_operands = 0 : i64, tpu.core_type = #tpu.core_type<tc>, window_params = [{transform_indices = @transform_0, window_bounds = array<i64: 1>}, {transform_indices = @transform_1, window_bounds = array<i64: 2, 1024>}, {transform_indices = @transform_2, window_bounds = array<i64: 2, 1024>}]} {
    %c0 = arith.constant 0 : index
    %0 = memref.load %arg1[%c0] : memref<1xf32, #tpu.memory_space<smem>>
    %c0_0 = arith.constant 0 : index
    %c0_1 = arith.constant 0 : index
    %1 = vector.load %arg2[%c0_0, %c0_1] : memref<2x1024xf32, #tpu.memory_space<vmem>>, vector<2x1024xf32>
    %2 = vector.broadcast %0 : f32 to vector<2x1024xf32>
    %3 = arith.mulf %1, %2 : vector<2x1024xf32>
    %c0_2 = arith.constant 0 : index
    %c0_3 = arith.constant 0 : index
    %4 = vector.load %arg3[%c0_2, %c0_3] : memref<2x1024xf32, #tpu.memory_space<vmem>>, vector<2x1024xf32>
    tpu.vector_store %arg3[%c0_2, %c0_3], %3 {strides = array<i32>} : memref<2x1024xf32, #tpu.memory_space<vmem>>, vector<2x1024xf32>,
    return
  }
  func.func @transform_0(%arg0: i32) -> i32 {
    %c0_i32 = arith.constant 0 : i32
    %c0_i32_0 = arith.constant 0 : i32
    return %c0_i32 : i32
  }
  func.func @transform_1(%arg0: i32) -> (i32, i32) {
    %c0_i32 = arith.constant 0 : i32
    %c0_i32_0 = arith.constant 0 : i32
    return %arg0, %c0_i32 : i32, i32
  }
  func.func @transform_2(%arg0: i32) -> (i32, i32) {
    %c0_i32 = arith.constant 0 : i32
    %c0_i32_0 = arith.constant 0 : i32
    return %arg0, %c0_i32 : i32, i32
  }
}

</mosaic_0001>

<bundles_post_ra>
// kernel: tpu_custom_call.1
= control target key start
LH: loop header
LB: loop body
LE: loop exit
PB: predicated region body
PF: predicated region fallthrough
CT: control target
= control target key end

     0   :  { %8 = vsyncpa [#allocation4], 0  ;;  %s120_s0 = inlined_call_operand.<no memory space> [shape: f32[1], index: 0, kind: input, shape index: {}]   ;;  %s121_s1 = inlined_call_operand.hbm [shape: f32[2,1024], index: 1, kind: input, shape index: {}]   ;;  %s122_s2 = inlined_call_operand.hbm [shape: f32[2,1024], index: 2, kind: output, shape index: {}]  }
   0x1   :  { %9 = vsyncpa [#allocation5], 0  ;;  %s94_s9 = smov [#allocation3]  }
   0x2   :  { %s18_s10 = sshll.u32 %s94_s9, 4  ;;  %s19_s10 = int_to_ptr.vmem [resolvable:$true] %s18_s10 }
   0x3   :  { %s58_s11 = scalar_lea.vmem %s19_s10, 256  ;;  %p63_p1 = scmp.lt.s32.totalorder %s19_s10, %s19_s10 }
   0x4   :  { %p59_p0 = scmp.ne.s32.totalorder %s19_s10, %s58_s11  ;;  %p64_p2 = scmp.lt.s32.totalorder %s58_s11, %s58_s11 }
   0x6   :  { %p65_p3 = por %p64_p2, %p63_p1 }
   0x8   :  { %p66_p4 = pnand %p65_p3, %p59_p0 }
   0xa   :  { %69 = shalt.err (!%p66_p4)
}
   0xb   :  { %21 = dma.hbm_to_vmem [thread:$0]  %s121_s1, 256, %s19_s10, [#allocation4]  }
   0xc   :  { %90 = dma.done.wait [#allocation4], 256  }
   0xd   :  { %91 = vsyncadd [#allocation4], 4294967040  ;;  %v28_v0 = vstv %s120_s0  ;;  %s95_s16 = smov [#allocation6]   ;;  %v26_v1 = vld [vmem:[#allocation3] sm:$0xff]  ;;  %v27_v2 = vld [vmem:[#allocation3 + $0x8] sm:$0xff] }
   0xe   :  { %s39_s17 = sshll.u32 %s95_s16, 4  ;;  %v29_v3 = vmul.f32 %v28_v0, %v26_v1  ;;  %v30_v4 = vmul.f32 %v28_v0, %v27_v2  ;;  %s40_s17 = int_to_ptr.vmem [resolvable:$true] %s39_s17 }
   0xf   :  { %s70_s18 = scalar_lea.vmem %s40_s17, 256  ;;  %p75_p6 = scmp.lt.s32.totalorder %s40_s17, %s40_s17 }
  0x10   :  { %31 = vst [vmem:[#allocation6] sm:$0xff] %v29_v3  ;;  %32 = vst [vmem:[#allocation6 + $0x8] sm:$0xff] %v30_v4  ;;  %p71_p5 = scmp.ne.s32.totalorder %s40_s17, %s70_s18  ;;  %p76_p7 = scmp.lt.s32.totalorder %s70_s18, %s70_s18 }
  0x12   :  { %p77_p8 = por %p76_p7, %p75_p6 }
  0x14   :  { %p78_p9 = pnand %p77_p8, %p71_p5 }
  0x16   :  { %81 = shalt.err (!%p78_p9)
}
  0x17   :  { %42 = dma.vmem_to_hbm [thread:$0]  %s40_s17, 256, %s122_s2, [#allocation5]  }
  0x18   :  { %92 = dma.done.wait [#allocation5], 256  }
  0x19   :  { %93 = vsyncadd [#allocation5], 4294967040 }
  0x1a   :  { %46 = vsyncpa [#allocation4], 1 }
  0x1b   :  { %47 = vsyncpa [#allocation5], 1 }

</bundles_post_ra>
